<compile_context>
chip_gen: v5e
topology: v5e:2x2
jax: 0.10.0
libtpu: 0.0.40
codegen_flags: <defaults>
</compile_context>

<pallas_src>
import functools

import jax
import jax.numpy as jnp
from jax.experimental import pallas as pl
from jax.experimental.pallas import tpu as pltpu

_MiB = 1024 * 1024


def _tpu_vmem_capacity():
    """Physical VMEM bytes per core, or None if not queryable."""
    try:
        return int(pltpu.get_tpu_info().vmem_capacity_bytes)
    except Exception:
        return None


def _vmem_limit(working_set_bytes, vmem_cap):
    """Scoped-VMEM limit: working set * 1.3 + headroom, capped per chip."""
    cap = int(0.75 * vmem_cap) if vmem_cap else 48 * _MiB
    want = int(working_set_bytes * 1.3) + 4 * _MiB
    want = max(want, 16 * _MiB)          # never below the smallest default
    return int(min(want, cap))


# ----------------------------------------------------------------------------
# Single-block fused kernel (small N, M): everything resident in VMEM, one dot.
# A may arrive in f32 (single-use) and is cast to bf16 right before the dot,
# avoiding a separate wrapper-side cast op / HBM round trip.
# ----------------------------------------------------------------------------
def _fused_single_block_kernel(a_ref, x_ref, o_ref, *, u, d):
    x = x_ref[...].astype(jnp.float32)
    # sigmoid(d*x - u) = 0.5*(1 + tanh(0.5*(d*x - u))): one EUP push, no divide;
    # elementwise math stays in f32 (v5e has no bf16 VPU/EUP).
    g = 0.5 + 0.5 * jnp.tanh(0.5 * (d * x - u))
    a = a_ref[...]
    if a.dtype != jnp.bfloat16:
        a = a.astype(jnp.bfloat16)       # in-kernel cast: no extra HBM traffic
    acc = jnp.dot(a, g.astype(jnp.bfloat16), preferred_element_type=jnp.float32)
    o_ref[...] = (acc - x).astype(o_ref.dtype)


# ----------------------------------------------------------------------------
# Tiled path, optional kernel 1: hoisted sigmoid pre-pass  G = sigmoid(d*x - u)
# (bf16).  Only used when there are many i-blocks (N/tm > 3); otherwise the
# sigmoid is recomputed inside the matmul kernel (cheaper in HBM bytes, and
# the tanh rides the idle EUP slot).
# ----------------------------------------------------------------------------
def _sigmoid_kernel(x_ref, g_ref, *, u, d):
    x = x_ref[...].astype(jnp.float32)
    g_ref[...] = (0.5 + 0.5 * jnp.tanh(0.5 * (d * x - u))).astype(g_ref.dtype)


# ----------------------------------------------------------------------------
# Tiled path, kernel 2: f = A @ G - x, residual folded into the accumulator.
# When the output dtype is f32 we accumulate directly into o_ref (no scratch).
#   fuse_sigmoid: ct_ref holds an x k-tile and G is recomputed in-kernel.
#   cast_a:       A tiles arrive in their original dtype, cast to bf16 here.
# ----------------------------------------------------------------------------
def _matmul_residual_kernel(a_ref, ct_ref, xi_ref, o_ref, acc_ref=None, *,
                            u, d, fuse_sigmoid, cast_a):
    acc = o_ref if acc_ref is None else acc_ref
    k = pl.program_id(2)

    @pl.when(k == 0)
    def _():
        # acc starts at -x: removes the final subtract pass and (in the f32
        # case) the accumulator scratch + extra store stream entirely.
        acc[...] = (-xi_ref[...]).astype(acc.dtype)

    a = a_ref[...]
    if cast_a:
        a = a.astype(jnp.bfloat16)

    if fuse_sigmoid:
        xk = ct_ref[...].astype(jnp.float32)
        g = (0.5 + 0.5 * jnp.tanh(0.5 * (d * xk - u))).astype(jnp.bfloat16)
    else:
        g = ct_ref[...]                   # pre-computed bf16 G tile

    acc[...] += jnp.dot(a, g, preferred_element_type=jnp.float32)

    if acc_ref is not None:  # trace-time branch: only when a scratch acc exists
        @pl.when(k == pl.num_programs(2) - 1)
        def _():
            o_ref[...] = acc_ref[...].astype(o_ref.dtype)


# ----------------------------------------------------------------------------
# Wrapper.
# ----------------------------------------------------------------------------
def neuronal_dynamics(
    A,
    x,
    *,
    u=3.5,
    d=2.0,
    tm=512,
    tn=512,
    tk=512,
    single_block_bytes=None,
):
    """f = -x + A @ (1/(1+exp(u - d*x)))  with A:(N,N), x:(N,M) -> (N,M).

    For repeated calls (ODE / guidance loops) pass a pre-cast bf16 A (or use
    the NeuronalDynamics class, which caches it) so no cast cost is paid on
    the hot path.
    """
    N, N2 = A.shape
    Nx, M = x.shape
    assert N == N2 == Nx, "A must be (N, N) and x (N, M)"

    u = float(u)
    d = float(d)
    itemsize = int(jnp.dtype(x.dtype).itemsize)
    itemsize_A = int(jnp.dtype(A.dtype).itemsize)
    out_shape = jax.ShapeDtypeStruct((N, M), x.dtype)

    vmem_cap = _tpu_vmem_capacity()
    if single_block_bytes is None:
        single_block_bytes = (
            12 * _MiB if vmem_cap is None else min(24 * _MiB, vmem_cap // 4)
        )

    # ---------------- Single-block fused path (small problems) ---------------
    # Optional trivial M-split so v7x's second TensorCore gets work; on 1-TC
    # chips it is one extra ~0.35us grid step, which is noise at these sizes.
    gm = 2 if (M >= 256 and M % 256 == 0) else 1
    Mb = M // gm
    buf = 2 if gm > 1 else 1
    footprint = (
        buf * N * N * itemsize_A                      # A window(s)
        + (N * N * 2 if jnp.dtype(A.dtype) != jnp.bfloat16 else 0)  # bf16 A temp
        + buf * 2 * N * Mb * itemsize                 # x-in + out blocks
        + N * Mb * (4 + 4 + 2 + 4)                    # f32 x, f32 g, bf16 g, f32 acc
    )

    if footprint <= single_block_bytes:
        cost = pl.CostEstimate(
            flops=2 * N * N * M,
            transcendentals=N * M,
            bytes_accessed=N * N * itemsize_A + 2 * N * M * itemsize,
        )
        cp_kwargs = dict(vmem_limit_bytes=_vmem_limit(footprint, vmem_cap))
        if gm > 1:
            grid_kwargs = dict(
                grid=(gm,),
                in_specs=[
                    pl.BlockSpec((N, N), lambda j: (0, 0)),   # A resident, re-fetch skipped
                    pl.BlockSpec((N, Mb), lambda j: (0, j)),
                ],
                out_specs=pl.BlockSpec((N, Mb), lambda j: (0, j)),
            )
            cp_kwargs["dimension_semantics"] = ("parallel",)  # megacore on v7x
        else:
            grid_kwargs = dict(
                in_specs=[
                    pl.BlockSpec(memory_space=pltpu.MemorySpace.VMEM),
                    pl.BlockSpec(memory_space=pltpu.MemorySpace.VMEM),
                ],
                out_specs=pl.BlockSpec(memory_space=pltpu.MemorySpace.VMEM),
            )
        return pl.pallas_call(
            functools.partial(_fused_single_block_kernel, u=u, d=d),
            out_shape=out_shape,
            compiler_params=pltpu.CompilerParams(**cp_kwargs),
            cost_estimate=cost,
            **grid_kwargs,
        )(A, x)

    # ---------------- Tiled path (large N / M) ----------------
    tm = min(tm, N)
    tn = min(tn, M)
    tk = min(tk, N)
    assert N % tm == 0 and M % tn == 0 and N % tk == 0, "use tile-aligned shapes"
    # TODO(synk): no padding/masking path for non-tile-aligned shapes.

    i_blocks = N // tm
    j_blocks = M // tn
    k_steps = N // tk

    # --- A stream preparation: avoid a per-call wrapper cast unless it pays.
    if jnp.dtype(A.dtype) == jnp.bfloat16:
        A_stream, cast_a, A_bytes = A, False, 2
    elif j_blocks > 3:
        # A is re-read j_blocks times inside the kernel; a one-off cast here is
        # strictly less HBM traffic.  (Loop callers should pre-cast instead.)
        A_stream, cast_a, A_bytes = A.astype(jnp.bfloat16), False, 2
    else:
        A_stream, cast_a, A_bytes = A, True, itemsize_A

    # --- Contraction operand: recompute sigmoid in-kernel when i-blocks are
    # few (less HBM traffic, EUP slot is idle), else hoist it to a pre-pass.
    fuse_sigmoid = i_blocks <= 3
    if fuse_sigmoid:
        contraction = x
        ct_bytes = itemsize
    else:
        sig_cost = pl.CostEstimate(
            flops=4 * N * M,
            transcendentals=N * M,
            bytes_accessed=N * M * (itemsize + 2),
        )
        contraction = pl.pallas_call(
            functools.partial(_sigmoid_kernel, u=u, d=d),
            out_shape=jax.ShapeDtypeStruct((N, M), jnp.bfloat16),
            grid=(N // tk, M // tn),
            in_specs=[pl.BlockSpec((tk, tn), lambda i, j: (i, j))],
            out_specs=pl.BlockSpec((tk, tn), lambda i, j: (i, j)),
            compiler_params=pltpu.CompilerParams(
                dimension_semantics=("parallel", "parallel")
            ),
            cost_estimate=sig_cost,
        )(x)
        ct_bytes = 2

    accumulate_in_out = jnp.dtype(x.dtype) == jnp.dtype(jnp.float32)
    scratch = [] if accumulate_in_out else [pltpu.VMEM((tm, tn), jnp.float32)]

    # Symmetric buffer depth on both per-k-step streams.
    nbuf = 3 if k_steps >= 3 else 2

    working_set = (
        nbuf * tm * tk * A_bytes            # A buffers
        + nbuf * tk * tn * ct_bytes         # contraction-operand buffers
        + 2 * tm * tn * itemsize            # residual x buffers
        + 2 * tm * tn * itemsize            # output buffers
        + (0 if accumulate_in_out else tm * tn * 4)
        + tm * tn * 12                      # elementwise f32/bf16 temporaries
    )

    mm_cost = pl.CostEstimate(
        flops=2 * N * N * M + (4 * N * M * i_blocks if fuse_sigmoid else 0),
        transcendentals=N * M * i_blocks if fuse_sigmoid else 0,
        bytes_accessed=(
            N * N * A_bytes * j_blocks      # A re-read per j block
            + N * M * ct_bytes * i_blocks   # contraction operand re-read per i block
            + N * M * itemsize              # residual x
            + N * M * itemsize              # output
        ),
    )

    return pl.pallas_call(
        functools.partial(
            _matmul_residual_kernel,
            u=u, d=d, fuse_sigmoid=fuse_sigmoid, cast_a=cast_a,
        ),
        out_shape=out_shape,
        grid_spec=pltpu.PrefetchScalarGridSpec(
            num_scalar_prefetch=0,
            grid=(i_blocks, j_blocks, k_steps),
            in_specs=[
                # A tile: rows i, contraction cols k; block index changes every
                # k step -> deepest buffering.
                pl.BlockSpec(
                    (tm, tk),
                    lambda i, j, k: (i, k),
                    pipeline_mode=pl.Buffered(nbuf),
                ),
                # Contraction operand tile (pre-computed G or raw x k-tile):
                # rows k, cols j; same cadence and size class as A -> same depth.
                pl.BlockSpec(
                    (tk, tn),
                    lambda i, j, k: (k, j),
                    pipeline_mode=pl.Buffered(nbuf),
                ),
                # x tile for the residual: rows i, cols j (fetched once per i,j).
                pl.BlockSpec((tm, tn), lambda i, j, k: (i, j)),
            ],
            out_specs=pl.BlockSpec((tm, tn), lambda i, j, k: (i, j)),
            scratch_shapes=scratch,
        ),
        compiler_params=pltpu.CompilerParams(
            dimension_semantics=("parallel", "parallel", "arbitrary"),
            vmem_limit_bytes=_vmem_limit(working_set, vmem_cap),
        ),
        cost_estimate=mm_cost,
    )(A_stream, contraction, x)


class NeuronalDynamics:
    """Mirror of the torch nn.Module: caches bf16 A once (loop-invariant)."""

    def __init__(self, A, u=3.5, d=2.0, **kernel_kwargs):
        self.A = jnp.asarray(A).astype(jnp.bfloat16)   # one-off cast, off hot path
        self.u = float(u)
        self.d = float(d)
        self.kernel_kwargs = kernel_kwargs

    def __call__(self, t, x):
        del t  # dynamics are autonomous, t unused (matches the torch module)
        return neuronal_dynamics(self.A, x, u=self.u, d=self.d, **self.kernel_kwargs)


def _reference(A, x, u=3.5, d=2.0):
    return -x + A @ (1.0 / (1.0 + jnp.exp(u - d * x)))


if __name__ == "__main__":
    key = jax.random.PRNGKey(0)
    k_mask, k_val, kx, kx2 = jax.random.split(key, 4)

    # --- Small problem (N = M = 256): single-block fused path (M split x2).
    N, M = 256, 256
    mask = (jax.random.uniform(k_mask, (N, N)) < 0.05).astype(jnp.float32)
    A = mask * jax.random.uniform(k_val, (N, N), dtype=jnp.float32)
    x = jax.random.normal(kx, (N, M), dtype=jnp.float32)
    f_ref = _reference(A, x)

    f = jax.block_until_ready(neuronal_dynamics(A, x, u=3.5, d=2.0))
    if not jnp.allclose(f, f_ref, atol=5e-2, rtol=5e-2):
        raise AssertionError("single-block Pallas kernel mismatch vs reference")

    # --- Same problem through the module-style wrapper (cached bf16 A path).
    dyn = NeuronalDynamics(A, u=3.5, d=2.0)
    f_mod = jax.block_until_ready(dyn(0.0, x))
    if not jnp.allclose(f_mod, f_ref, atol=5e-2, rtol=5e-2):
        raise AssertionError("cached-bf16-A Pallas kernel mismatch vs reference")

    # --- Larger problem forced onto the tiled path, fused-sigmoid branch
    #     (N/tm = 1 <= 3, A streamed f32 and cast in-kernel since M/tn = 1).
    N2, M2 = 512, 512
    mask2 = (jax.random.uniform(k_mask, (N2, N2)) < 0.05).astype(jnp.float32)
    A2 = mask2 * jax.random.uniform(k_val, (N2, N2), dtype=jnp.float32)
    x2 = jax.random.normal(kx2, (N2, M2), dtype=jnp.float32)
    f2_ref = _reference(A2, x2)

    f2 = jax.block_until_ready(
        neuronal_dynamics(
            A2, x2, u=3.5, d=2.0, tm=512, tn=512, tk=512, single_block_bytes=0
        )
    )
    if not jnp.allclose(f2, f2_ref, atol=5e-2, rtol=5e-2):
        raise AssertionError("tiled (fused-sigmoid) Pallas kernel mismatch vs reference")

    # --- Same problem with small tiles: exercises the hoisted sigmoid
    #     pre-pass branch (N/tm = 4 > 3) and the k-loop with 3-deep buffering.
    f3 = jax.block_until_ready(
        neuronal_dynamics(
            A2, x2, u=3.5, d=2.0, tm=128, tn=256, tk=256, single_block_bytes=0
        )
    )
    if not jnp.allclose(f3, f2_ref, atol=5e-2, rtol=5e-2):
        raise AssertionError("tiled (pre-pass) Pallas kernel mismatch vs reference")

    print("KERNEL_OK")
</pallas_src>

<mosaic_0001>
module attributes {stable_mosaic.version = 11 : i64} {
  func.func @_fused_single_block_kernel(%arg0: i32, %arg1: memref<256x256xf32, #tpu.memory_space<vmem>>, %arg2: memref<256x128xf32, #tpu.memory_space<vmem>>, %arg3: memref<256x128xf32, #tpu.memory_space<vmem>>) attributes {dimension_semantics = [#tpu.dimension_semantics<parallel>], iteration_bounds = array<i64: 2>, scalar_prefetch = 0 : i64, scratch_operands = 0 : i64, tpu.core_type = #tpu.core_type<tc>, window_params = [{pipeline_mode = #tpu.pipeline_mode<synchronous>, transform_indices = @transform_0, window_bounds = array<i64: 256, 256>}, {transform_indices = @transform_1, window_bounds = array<i64: 256, 128>}, {transform_indices = @transform_2, window_bounds = array<i64: 256, 128>}]} {
    %c0 = arith.constant 0 : index
    %c0_0 = arith.constant 0 : index
    %0 = vector.load %arg2[%c0, %c0_0] : memref<256x128xf32, #tpu.memory_space<vmem>>, vector<256x128xf32>
    %cst = arith.constant 2.000000e+00 : f32
    %1 = vector.broadcast %cst : f32 to vector<256x128xf32>
    %2 = arith.mulf %1, %0 : vector<256x128xf32>
    %cst_1 = arith.constant 3.500000e+00 : f32
    %3 = vector.broadcast %cst_1 : f32 to vector<256x128xf32>
    %4 = arith.subf %2, %3 : vector<256x128xf32>
    %cst_2 = arith.constant 5.000000e-01 : f32
    %5 = vector.broadcast %cst_2 : f32 to vector<256x128xf32>
    %6 = arith.mulf %5, %4 : vector<256x128xf32>
    %7 = math.tanh %6 : vector<256x128xf32>
    %cst_3 = arith.constant 5.000000e-01 : f32
    %8 = vector.broadcast %cst_3 : f32 to vector<256x128xf32>
    %9 = arith.mulf %8, %7 : vector<256x128xf32>
    %cst_4 = arith.constant 5.000000e-01 : f32
    %10 = vector.broadcast %cst_4 : f32 to vector<256x128xf32>
    %11 = arith.addf %10, %9 : vector<256x128xf32>
    %c0_5 = arith.constant 0 : index
    %c0_6 = arith.constant 0 : index
    %12 = vector.load %arg1[%c0_5, %c0_6] : memref<256x256xf32, #tpu.memory_space<vmem>>, vector<256x256xf32>
    %13 = arith.truncf %12 : vector<256x256xf32> to vector<256x256xbf16>
    %14 = arith.truncf %11 : vector<256x128xf32> to vector<256x128xbf16>
    %cst_7 = arith.constant dense<0.000000e+00> : vector<256x128xf32>
    %15 = tpu.matmul %13, %14, %cst_7 {dimension_numbers = #tpu.dot_dimension_numbers<[1], [0], [0], [1], [0, 0, 1, 1], [], []>} : vector<256x256xbf16>, vector<256x128xbf16>, vector<256x128xf32> -> vector<256x128xf32>
    %16 = arith.subf %15, %0 : vector<256x128xf32>
    %c0_8 = arith.constant 0 : index
    %c0_9 = arith.constant 0 : index
    %17 = vector.load %arg3[%c0_8, %c0_9] : memref<256x128xf32, #tpu.memory_space<vmem>>, vector<256x128xf32>
    tpu.vector_store %arg3[%c0_8, %c0_9], %16 {strides = array<i32>} : memref<256x128xf32, #tpu.memory_space<vmem>>, vector<256x128xf32>,
    return
  }
  func.func @transform_0(%arg0: i32) -> (i32, i32) {
    %c0_i32 = arith.constant 0 : i32
    %c0_i32_0 = arith.constant 0 : i32
    %c0_i32_1 = arith.constant 0 : i32
    return %c0_i32, %c0_i32_0 : i32, i32
  }
  func.func @transform_1(%arg0: i32) -> (i32, i32) {
    %c0_i32 = arith.constant 0 : i32
    %c0_i32_0 = arith.constant 0 : i32
    return %c0_i32, %arg0 : i32, i32
  }
  func.func @transform_2(%arg0: i32) -> (i32, i32) {
    %c0_i32 = arith.constant 0 : i32
    %c0_i32_0 = arith.constant 0 : i32
    return %c0_i32, %arg0 : i32, i32
  }
}

</mosaic_0001>

<bundles_post_ra>
// kernel: tpu_custom_call.1
= control target key start
LH: loop header
LB: loop body
LE: loop exit
PB: predicated region body
PF: predicated region fallthrough
CT: control target
= control target key end

     0   :  { %7 = vsyncpa [#allocation3], 0  ;;  %s1523_s0 = inlined_call_operand.hbm [shape: f32[256,256], index: 0, kind: input, shape index: {}]   ;;  %s1524_s1 = inlined_call_operand.hbm [shape: f32[256,256], index: 1, kind: input, shape index: {}]   ;;  %s1525_s2 = inlined_call_operand.hbm [shape: f32[256,256], index: 2, kind: output, shape index: {}]  }
   0x1   :  { %8 = vsyncpa [#allocation6], 0 }
   0x2   :  { %10 = vsyncpa [#allocation6 + $0x1], 0 }
   0x3   :  { %11 = vsyncpa [#allocation4], 0 }
   0x4   :  { %13 = vsyncpa [#allocation4 + $0x1], 0  ;;  %s1215_s9 = smov 0   ;;  %s1217_s10 = smov 0  }
   0x5   :  { %s1219_s11 = smov 0   ;;  %s1221_s12 = smov 0  }
   0x6 LB: > { %s1236_s13 = sadd.s32 4294967295, %s1190_s12   ;;  %s858_s14 = sadd.s32 4294967294, %s1190_s12   ;;  %s1190_s12 = sphi %s1221_s12, %s1535_s12   ;;  %s1186_s11 = sphi %s1219_s11, %s1534_s11   ;;  %s1182_s10 = sphi %s1217_s10, %s1533_s10   ;;  %s1178_s9 = sphi %s1215_s9, %s1532_s9  }
   0x7   : > { %p60_p0 = scmp.ne.s32.totalorder %s1182_s10, %s1178_s9  ;;  %p61_p1 = scmp.eq.s32.totalorder %s1236_s13, 0 }
   0x8   : > { %p84_p2 = scmp.eq.s32.totalorder %s1236_s13, 1  ;;  %p90_p3 = scmp.eq.s32.totalorder %s858_s14, 1 }
   0x9   : > { %p1245_p4 = por %p61_p1, %p60_p0  ;;  %p859_p5 = scmp.ge.s32.totalorder %s1190_s12, 1 }
   0xa   : > { %p1250_p6 = por %p90_p3, %p60_p0  ;;  %p97_p7 = scmp.lt.s32.totalorder %s1190_s12, 3 }
   0xb   : > { %s108_s19 = sshll.u32 %s1523_s0, 4  ;;  %s1192_s21 = smov [#allocation2]   ;;  %s109_s19 = int_to_ptr.hbm [resolvable:$true] %s108_s19 }
   0xc   : > { %p1258_p8 = pnand %p859_p5, %p97_p7  ;;  %s110_s22 = sshll.u32 %s1192_s21, 4  ;;  %s111_s22 = int_to_ptr.vmem [resolvable:$true] %s110_s22 }
   0xd   : > { %s1268_s23 = sadd.s32 1, %s1190_s12   ;;  %s1193_s24 = smov 256  }
   0xe   : > { %p928_p9 = pneg %p1258_p8  ;;  %s1194_s25 = smov 16  }
   0xf   : > { %s44_s26 = ssub.s32 %s1190_s12, %s1268_s23  ;;  %s47_s27 = sadd.s32 1, %s1186_s11 }
  0x10   : > { %p929_p10 = pnand %p928_p9, %p61_p1  ;;  %p45_p12 = scmp.eq.s32.totalorder %s44_s26, 0 }
  0x11   : > { %p54_p13 = scmp.ne.s32.totalorder %s1186_s11, %s1182_s10  ;;  %p55_p0 = scmp.eq.s32.totalorder %s1190_s12, 0 }
  0x12   : > { %931 = dma.hbm_to_vmem [thread:$0]  (!%p929_p10), %s109_s19, 8192, %s111_s22, [#allocation3], %s1193_s24, %s1193_s24, %s1194_s25  }
  0x13   : > { %p941_p3 = scmp.lt.s32.totalorder %s1190_s12, 2  ;;  %p56_p5 = por %p55_p0, %p54_p13 }
  0x14   : > { %s1280_s28 = scalar_select %p45_p12, %s1186_s11, %s47_s27  }
  0x15   : > { %p1284_p7 = por %p84_p2, %p54_p13  ;;  %s124_s30 = sand.u32 1, %s1186_s11  }
  0x16   : > { %s863_s3 = sshll.u32 %s1190_s12, 3  ;;  %s862_s4 = sshll.u32 %s124_s30, 8 }
  0x17   : > { %s132_s7 = scalar_lea.hbm %s1524_s1, %s863_s3  ;;  %s128_s14 = scalar_lea.vmem [#allocation5], %s862_s4 }
  0x18   : > { %s133_s8 = sshll.u32 %s132_s7, 4  ;;  %s135_s17 = sshll.u32 %s128_s14, 4  ;;  %s134_s8 = int_to_ptr.hbm [resolvable:$true] %s133_s8  ;;  %s136_s17 = int_to_ptr.vmem [resolvable:$true] %s135_s17 }
  0x19   : > { %p1295_p9 = pnand %p941_p3, %p56_p5  ;;  %s125_s19 = scalar_lea.sflag [#allocation6], %s124_s30 }
  0x1a   : > { %s1090_s21 = sshra.s32 %s134_s8, 4  ;;  %s1097_s27 = scalar_lea.hbm %s1524_s1, 512  ;;  %s1091_s21 = int_to_ptr.hbm [resolvable:$true] %s1090_s21 }
  0x1b   : > { %s1092_s22 = scalar_lea.hbm %s1091_s21, 256  ;;  %p1094_p10 = pneg %p1295_p9 }
  0x1c   : > { %p1093_p2 = scmp.ne.s32.totalorder %s1091_s21, %s1092_s22  ;;  %p1098_p0 = scmp.lt.s32.totalorder %s1091_s21, %s1524_s1 }
  0x1d   : > { %p1099_p3 = scmp.lt.s32.totalorder %s1097_s27, %s1092_s22 }
  0x1e   : > { %p1095_p12 = pnand %p1094_p10, %p1093_p2 }
  0x1f   : > { %p1100_p5 = por %p1099_p3, %p1098_p0 }
  0x20   : > { %p1096_p13 = pneg %p1095_p12 }
  0x22   : > { %p1101_p11 = pnand %p1100_p5, %p1096_p13 }
  0x24   : > { %1104 = shalt.err (!%p1101_p11)
}
  0x25   : > { %s1195_s30 = smov 128   ;;  %s1196_s5 = smov 8  }
  0x26   : > { %935 = dma.hbm_to_vmem [thread:$0]  (!%p1295_p9), %s134_s8, 4096, %s136_s17, %s125_s19, %s1193_s24, %s1195_s30, %s1196_s5  }
  0x27   : > { %147 = sbr.rel (%p1258_p8) target bundleno = 376 (0x178), region = 28 }
  0x2c   : > { %1165 = dma.done.wait (%p61_p1), [#allocation3], 8192  }
  0x2d   : > { %1167 = vsyncadd (%p61_p1), [#allocation3], 4294959104  ;;  %s1317_s6 = sand.u32 1, %s1182_s10  }
  0x2e   : > { %s866_s7 = sshll.u32 %s1317_s6, 8  ;;  %s155_s14 = scalar_lea.sflag [#allocation6], %s1317_s6 }
  0x2f   : > { %s1323_s24 = scalar_lea.vmem [#allocation5], %s866_s7 }
  0x30   : > { %1169 = dma.done.wait (%p1245_p4), %s155_s14, 4096  }
  0x31   : > { %1171 = vsyncadd (%p1245_p4), %s155_s14, 4294963200  ;;  %v194_v0 = vld [vmem:[%s1323_s24 + $0x70] sm:$0xff]  ;;  %v195_v1 = vld [vmem:[%s1323_s24 + $0x78] sm:$0xff]  ;;  %s1424_s15 = scalar_lea.vmem [#allocation7], %s866_s7  ;;  %s901_s20 = sshll.u32 %s1236_s13, 3 }
  0x32   : > { %v210_v2 = vld [vmem:[%s1323_s24 + $0xf0] sm:$0xff]  ;;  %v226_v3 = vmul.f32 2.0, %v194_v0  ;;  %v227_v4 = vmul.f32 2.0, %v195_v1  ;;  %v211_v5 = vld [vmem:[%s1323_s24 + $0xf8] sm:$0xff]  ;;  %v192_v7 = vld [vmem:[%s1323_s24 + $0x60] sm:$0xff]  ;;  %s769_s18 = scalar_lea.hbm %s1525_s2, %s901_s20  ;;  %s770_s19 = sshll.u32 %s1424_s15, 4  ;;  %s771_s19 = int_to_ptr.vmem [resolvable:$true] %s770_s19 }
  0x33   : > { %v242_v6 = vmul.f32 2.0, %v210_v2  ;;  %v193_v8 = vld [vmem:[%s1323_s24 + $0x68] sm:$0xff]  ;;  %v243_v9 = vmul.f32 2.0, %v211_v5  ;;  %v224_v10 = vmul.f32 2.0, %v192_v7  ;;  %v208_v12 = vld [vmem:[%s1323_s24 + $0xe0] sm:$0xff]  ;;  %v190_v22 = vld [vmem:[%s1323_s24 + $0x50] sm:$0xff] }
  0x34   : > { %v225_v11 = vmul.f32 2.0, %v193_v8  ;;  %v209_v13 = vld [vmem:[%s1323_s24 + $0xe8] sm:$0xff]  ;;  %v882_v14 = vadd.f32 -3.5, %v226_v3  ;;  %v883_v15 = vadd.f32 -3.5, %v227_v4  ;;  %v240_v17 = vmul.f32 2.0, %v208_v12  ;;  %v191_v23 = vld [vmem:[%s1323_s24 + $0x58] sm:$0xff] }
  0x35   : > { %v898_v16 = vadd.f32 -3.5, %v242_v6  ;;  %v899_v18 = vadd.f32 -3.5, %v243_v9  ;;  %v880_v19 = vadd.f32 -3.5, %v224_v10  ;;  %v241_v21 = vmul.f32 2.0, %v209_v13  ;;  %v206_v28 = vld [vmem:[%s1323_s24 + $0xd0] sm:$0xff]  ;;  %v207_v29 = vld [vmem:[%s1323_s24 + $0xd8] sm:$0xff] }
  0x36   : > { %v881_v20 = vadd.f32 -3.5, %v225_v11  ;;  %v290_v24 = vmul.f32 0.5, %v882_v14  ;;  %v291_v25 = vmul.f32 0.5, %v883_v15  ;;  %v896_v27 = vadd.f32 -3.5, %v240_v17  ;;  %v1342_v34 = vld [vmem:[%s1323_s24 + $0x40] sm:$0xff]  ;;  %v1345_v38 = vld [vmem:[%s1323_s24 + $0x48] sm:$0xff] }
  0x37   : > { %v306_v26 = vmul.f32 0.5, %v898_v16  ;;  %v307_v30 = vmul.f32 0.5, %v899_v18  ;;  %v288_v31 = vmul.f32 0.5, %v880_v19  ;;  %v897_v33 = vadd.f32 -3.5, %v241_v21  ;;  %v1350_v48 = vld [vmem:[%s1323_s24 + $0xc0] sm:$0xff]  ;;  %v1353_v49 = vld [vmem:[%s1323_s24 + $0xc8] sm:$0xff] }
  0x38   : > { %v289_v32 = vmul.f32 0.5, %v881_v20  ;;  %984 = vtanh.f32 %v290_v24  ;;  %v304_v35 = vmul.f32 0.5, %v896_v27  ;;  %v222_v36 = vmul.f32 2.0, %v190_v22  ;;  %v1356_v53 = vld [vmem:[%s1323_s24 + $0x30] sm:$0xff]  ;;  %v1361_v61 = vld [vmem:[%s1323_s24 + $0x38] sm:$0xff]  ;;  %s772_s21 = sshll.u32 %s769_s18, 4  ;;  %s773_s21 = int_to_ptr.hbm [resolvable:$true] %s772_s21 }
  0x39   : > { %v223_v37 = vmul.f32 2.0, %v191_v23  ;;  %986 = vtanh.f32 %v291_v25  ;;  %v305_v39 = vmul.f32 0.5, %v897_v33  ;;  %v238_v40 = vmul.f32 2.0, %v206_v28  ;;  %s759_s13 = scalar_lea.sflag [#allocation4], %s1317_s6  ;;  %s1134_s22 = sshra.s32 %s773_s21, 4  ;;  %s1135_s22 = int_to_ptr.hbm [resolvable:$true] %s1134_s22 }
  0x3a   : > { %v239_v41 = vmul.f32 2.0, %v207_v29  ;;  %988 = vtanh.f32 %v306_v26  ;;  %v878_v42 = vadd.f32 -3.5, %v222_v36  ;;  %v220_v44 = vmul.f32 2.0, %v1342_v34  ;;  %s1136_s25 = scalar_lea.hbm %s1135_s22, 256  ;;  %s1140_s3 = scalar_lea.hbm %s1525_s2, 512 }
  0x3b   : > { %v879_v43 = vadd.f32 -3.5, %v223_v37  ;;  %990 = vtanh.f32 %v307_v30  ;;  %v894_v45 = vadd.f32 -3.5, %v238_v40  ;;  %v221_v47 = vmul.f32 2.0, %v1345_v38  ;;  %v1366_v30 = vld [vmem:[%s1323_s24 + $0xb0] sm:$0xff]  ;;  %p1137_p1 = scmp.ne.s32.totalorder %s1135_s22, %s1136_s25  ;;  %p1141_p11 = scmp.lt.s32.totalorder %s1135_s22, %s1525_s2 }
  0x3c   : > { %v895_v46 = vadd.f32 -3.5, %v239_v41  ;;  %992 = vtanh.f32 %v288_v31  ;;  %v286_v50 = vmul.f32 0.5, %v878_v42  ;;  %v876_v52 = vadd.f32 -3.5, %v220_v44  ;;  %v1369_v42 = vld [vmem:[%s1323_s24 + $0xb8] sm:$0xff]  ;;  %p1142_p9 = scmp.lt.s32.totalorder %s1140_s3, %s1136_s25 }
  0x3d   : > { %v287_v51 = vmul.f32 0.5, %v879_v43  ;;  %994 = vtanh.f32 %v289_v32  ;;  %v302_v54 = vmul.f32 0.5, %v894_v45  ;;  %v877_v56 = vadd.f32 -3.5, %v221_v47  ;;  %p1138_p4 = pnand %p1137_p1, %p1284_p7 }
  0x3e   : > { %v303_v55 = vmul.f32 0.5, %v895_v46  ;;  %v985_v57 = vpop.eup %984  ;;  %996 = vtanh.f32 %v304_v35  ;;  %v284_v58 = vmul.f32 0.5, %v876_v52  ;;  %v236_v59 = vmul.f32 2.0, %v1350_v48  ;;  %p1143_p2 = por %p1142_p9, %p1141_p11 }
  0x3f   : > { %v237_v60 = vmul.f32 2.0, %v1353_v49  ;;  %v987_v62 = vpop.eup %986  ;;  %v354_v63 = vmul.f32 0.5, %v985_v57  ;;  %998 = vtanh.f32 %v305_v39  ;;  %v285_v0 = vmul.f32 0.5, %v877_v56  ;;  %p1139_p8 = pneg %p1138_p4 }
  0x40   : > { %v218_v1 = vmul.f32 2.0, %v1356_v53  ;;  %v989_v2 = vpop.eup %988  ;;  %v355_v3 = vmul.f32 0.5, %v987_v62  ;;  %1000 = vtanh.f32 %v286_v50  ;;  %v892_v4 = vadd.f32 -3.5, %v236_v59 }
  0x41   : > { %v893_v5 = vadd.f32 -3.5, %v237_v60  ;;  %v991_v6 = vpop.eup %990  ;;  %v386_v7 = vadd.f32 0.5, %v354_v63  ;;  %v370_v8 = vmul.f32 0.5, %v989_v2  ;;  %1002 = vtanh.f32 %v287_v51  ;;  %v1377_v2 = vld [vmem:[%s1323_s24 + $0x28] sm:$0xff]  ;;  %p1144_p10 = pnand %p1143_p2, %p1139_p8 }
  0x42   : > { %v219_v9 = vmul.f32 2.0, %v1361_v61  ;;  %v993_v10 = vpop.eup %992  ;;  %v387_v11 = vadd.f32 0.5, %v355_v3  ;;  %v371_v12 = vmul.f32 0.5, %v991_v6  ;;  %1004 = vtanh.f32 %v302_v54 }
  0x43   : > { %v300_v13 = vmul.f32 0.5, %v892_v4  ;;  %v995_v14 = vpop.eup %994  ;;  %v402_v15 = vadd.f32 0.5, %v370_v8  ;;  %v352_v16 = vmul.f32 0.5, %v993_v10  ;;  %1006 = vtanh.f32 %v303_v55  ;;  %v1373_v55 = vld [vmem:[%s1323_s24 + $0x20] sm:$0xff] }
  0x44   : > { %v301_v17 = vmul.f32 0.5, %v893_v5  ;;  %v997_v18 = vpop.eup %996  ;;  %v507_v19 = vpack.c.bf16 %v387_v11, %v386_v7  ;;  %v403_v20 = vadd.f32 0.5, %v371_v12  ;;  %v353_v21 = vmul.f32 0.5, %v995_v14  ;;  %v1381_v8 = vld [vmem:[%s1323_s24 + $0xa0] sm:$0xff] }
  0x45   : > { %1008 = vtanh.f32 %v284_v58  ;;  %v999_v22 = vpop.eup %998  ;;  %v384_v23 = vadd.f32 0.5, %v352_v16  ;;  %v368_v24 = vmul.f32 0.5, %v997_v18  ;;  %v874_v25 = vadd.f32 -3.5, %v218_v1 }
  0x46   : > { %1010 = vtanh.f32 %v285_v0  ;;  %v1001_v26 = vpop.eup %1000  ;;  %516 = vmatpush.bf16.msra.mxu0 %v507_v19  ;;  %904 = vmatpush.bf16.msra.mxu2 %v507_v19  ;;  %v515_v27 = vpack.c.bf16 %v403_v20, %v402_v15  ;;  %v385_v28 = vadd.f32 0.5, %v353_v21  ;;  %v369_v29 = vmul.f32 0.5, %v999_v22  ;;  %v1389_v22 = vld [vmem:[%s1323_s24 + $0x10] sm:$0xff] }
  0x47   : > { %1012 = vtanh.f32 %v300_v13  ;;  %v1003_v31 = vpop.eup %1002  ;;  %v400_v32 = vadd.f32 0.5, %v368_v24  ;;  %v350_v33 = vmul.f32 0.5, %v1001_v26  ;;  %v875_v35 = vadd.f32 -3.5, %v219_v9 }
  0x48   : > { %1014 = vtanh.f32 %v301_v17  ;;  %v1005_v36 = vpop.eup %1004  ;;  %605 = vmatpush.bf16.msra.mxu1 %v515_v27  ;;  %912 = vmatpush.bf16.msra.mxu3 %v515_v27  ;;  %v506_v37 = vpack.c.bf16 %v385_v28, %v384_v23  ;;  %v401_v39 = vadd.f32 0.5, %v369_v29  ;;  %v351_v40 = vmul.f32 0.5, %v1003_v31  ;;  %v1385_v17 = vld [vmem:[%s1323_s24 + $0xa8] sm:$0xff]  ;;  %v1392_v27 = vld [vmem:[%s1323_s24 + $0x18] sm:$0xff] }
  0x49   : > { %v282_v41 = vmul.f32 0.5, %v874_v25  ;;  %v1007_v43 = vpop.eup %1006  ;;  %v382_v44 = vadd.f32 0.5, %v350_v33  ;;  %v366_v45 = vmul.f32 0.5, %v1005_v36  ;;  %v283_v46 = vmul.f32 0.5, %v875_v35  ;;  %v1396_v33 = vld [vmem:[%s1323_s24 + $0x90] sm:$0xff]  ;;  %v1399_v35 = vld [vmem:[%s1323_s24 + $0x98] sm:$0xff] }
  0x4a   : > { %v234_v47 = vmul.f32 2.0, %v1366_v30  ;;  %517 = vmatpush.bf16.msra.mxu0 %v506_v37  ;;  %905 = vmatpush.bf16.msra.mxu2 %v506_v37  ;;  %v514_v51 = vpack.c.bf16 %v401_v39, %v400_v32  ;;  %v383_v52 = vadd.f32 0.5, %v351_v40  ;;  %v367_v54 = vmul.f32 0.5, %v1007_v43 }
  0x4b   : > { %v1009_v50 = vpop.eup %1008  ;;  %1016 = vtanh.f32 %v282_v41  ;;  %v398_v57 = vadd.f32 0.5, %v366_v45  ;;  %v235_v59 = vmul.f32 2.0, %v1369_v42  ;;  %v216_v7 = vmul.f32 2.0, %v1373_v55 }
  0x4c   : > { %v1011_v56 = vpop.eup %1010  ;;  %v348_v58 = vmul.f32 0.5, %v1009_v50  ;;  %1018 = vtanh.f32 %v283_v46  ;;  %606 = vmatpush.bf16.msra.mxu1 %v514_v51  ;;  %913 = vmatpush.bf16.msra.mxu3 %v514_v51  ;;  %v505_v62 = vpack.c.bf16 %v383_v52, %v382_v44  ;;  %v399_v63 = vadd.f32 0.5, %v367_v54  ;;  %v1406_v50 = vld [vmem:[%s1323_s24] sm:$0xff] }
  0x4d   : > { %v1013_v60 = vpop.eup %1012  ;;  %v349_v0 = vmul.f32 0.5, %v1011_v56  ;;  %v890_v1 = vadd.f32 -3.5, %v234_v47  ;;  %v891_v6 = vadd.f32 -3.5, %v235_v59  ;;  %v217_v15 = vmul.f32 2.0, %v1377_v2 }
  0x4e   : > { %v1015_v3 = vpop.eup %1014  ;;  %v380_v4 = vadd.f32 0.5, %v348_v58  ;;  %v364_v5 = vmul.f32 0.5, %v1013_v60  ;;  %518 = vmatpush.bf16.msra.mxu0 %v505_v62  ;;  %906 = vmatpush.bf16.msra.mxu2 %v505_v62  ;;  %v513_v9 = vpack.c.bf16 %v399_v63, %v398_v57  ;;  %v872_v16 = vadd.f32 -3.5, %v216_v7  ;;  %v1409_v63 = vld [vmem:[%s1323_s24 + $0x8] sm:$0xff] }
  0x4f   : > { %v381_v10 = vadd.f32 0.5, %v349_v0  ;;  %v365_v11 = vmul.f32 0.5, %v1015_v3  ;;  %v298_v12 = vmul.f32 0.5, %v890_v1  ;;  %v299_v14 = vmul.f32 0.5, %v891_v6 }
  0x50   : > { %v396_v13 = vadd.f32 0.5, %v364_v5  ;;  %607 = vmatpush.bf16.msra.mxu1 %v513_v9  ;;  %914 = vmatpush.bf16.msra.mxu3 %v513_v9  ;;  %v232_v21 = vmul.f32 2.0, %v1381_v8  ;;  %v873_v25 = vadd.f32 -3.5, %v217_v15  ;;  %v280_v26 = vmul.f32 0.5, %v872_v16  ;;  %v1416_v5 = vld [vmem:[%s1323_s24 + $0x88] sm:$0xff] }
  0x51   : > { %v1017_v18 = vpop.eup %1016  ;;  %v504_v19 = vpack.c.bf16 %v381_v10, %v380_v4  ;;  %v397_v20 = vadd.f32 0.5, %v365_v11  ;;  %1020 = vtanh.f32 %v298_v12  ;;  %v233_v31 = vmul.f32 2.0, %v1385_v17  ;;  %v1413_v4 = vld [vmem:[%s1323_s24 + $0x80] sm:$0xff] }
  0x52   : > { %v1019_v23 = vpop.eup %1018  ;;  %v346_v24 = vmul.f32 0.5, %v1017_v18  ;;  %1022 = vtanh.f32 %v299_v14  ;;  %v888_v32 = vadd.f32 -3.5, %v232_v21  ;;  %v281_v37 = vmul.f32 0.5, %v873_v25 }
  0x53   : > { %519 = vmatpush.bf16.msra.mxu0 %v504_v19  ;;  %907 = vmatpush.bf16.msra.mxu2 %v504_v19  ;;  %v512_v28 = vpack.c.bf16 %v397_v20, %v396_v13  ;;  %v347_v29 = vmul.f32 0.5, %v1019_v23  ;;  %1024 = vtanh.f32 %v280_v26  ;;  %v214_v39 = vmul.f32 2.0, %v1389_v22 }
  0x54   : > { %v378_v36 = vadd.f32 0.5, %v346_v24  ;;  %v889_v41 = vadd.f32 -3.5, %v233_v31  ;;  %v296_v43 = vmul.f32 0.5, %v888_v32  ;;  %v215_v44 = vmul.f32 2.0, %v1392_v27 }
  0x55   : > { %608 = vmatpush.bf16.msra.mxu1 %v512_v28  ;;  %915 = vmatpush.bf16.msra.mxu3 %v512_v28  ;;  %v379_v40 = vadd.f32 0.5, %v347_v29  ;;  %1026 = vtanh.f32 %v281_v37  ;;  %v870_v45 = vadd.f32 -3.5, %v214_v39  ;;  %v230_v46 = vmul.f32 2.0, %v1396_v33 }
  0x56   : > { %v231_v47 = vmul.f32 2.0, %v1399_v35  ;;  %v297_v54 = vmul.f32 0.5, %v889_v41  ;;  %1028 = vtanh.f32 %v296_v43  ;;  %v871_v56 = vadd.f32 -3.5, %v215_v44 }
  0x57   : > { %v1021_v51 = vpop.eup %1020  ;;  %v503_v52 = vpack.c.bf16 %v379_v40, %v378_v36  ;;  %v278_v59 = vmul.f32 0.5, %v870_v45  ;;  %v886_v60 = vadd.f32 -3.5, %v230_v46  ;;  %v212_v3 = vmul.f32 2.0, %v1406_v50 }
  0x58   : > { %v1023_v57 = vpop.eup %1022  ;;  %v362_v58 = vmul.f32 0.5, %v1021_v51  ;;  %v887_v62 = vadd.f32 -3.5, %v231_v47  ;;  %1030 = vtanh.f32 %v297_v54  ;;  %v279_v1 = vmul.f32 0.5, %v871_v56 }
  0x59   : > { %520 = vmatpush.bf16.msra.mxu0 %v503_v52  ;;  %908 = vmatpush.bf16.msra.mxu2 %v503_v52  ;;  %v363_v0 = vmul.f32 0.5, %v1023_v57  ;;  %v1025_v6 = vpop.eup %1024  ;;  %1032 = vtanh.f32 %v278_v59  ;;  %v294_v9 = vmul.f32 0.5, %v886_v60  ;;  %v213_v13 = vmul.f32 2.0, %v1409_v63 }
  0x5a   : > { %v394_v7 = vadd.f32 0.5, %v362_v58  ;;  %v295_v10 = vmul.f32 0.5, %v887_v62  ;;  %v344_v12 = vmul.f32 0.5, %v1025_v6  ;;  %1034 = vtanh.f32 %v279_v1 }
  0x5b   : > { %v395_v11 = vadd.f32 0.5, %v363_v0  ;;  %v1027_v14 = vpop.eup %1026  ;;  %1036 = vtanh.f32 %v294_v9  ;;  %v868_v15 = vadd.f32 -3.5, %v212_v3  ;;  %v228_v16 = vmul.f32 2.0, %v1413_v4 }
  0x5c   : > { %v229_v18 = vmul.f32 2.0, %v1416_v5  ;;  %v1029_v19 = vpop.eup %1028  ;;  %v345_v21 = vmul.f32 0.5, %v1027_v14  ;;  %v376_v23 = vadd.f32 0.5, %v344_v12  ;;  %1038 = vtanh.f32 %v295_v10 }
  0x5d   : > { %v511_v20 = vpack.c.bf16 %v395_v11, %v394_v7  ;;  %v360_v24 = vmul.f32 0.5, %v1029_v19  ;;  %v869_v25 = vadd.f32 -3.5, %v213_v13  ;;  %v276_v26 = vmul.f32 0.5, %v868_v15  ;;  %v404_v15 = vld [vmem:[#allocation2] sm:$0xff]  ;;  %v406_v19 = vld [vmem:[#allocation2 + $0x10] sm:$0xff] }
  0x5e   : > { %v884_v28 = vadd.f32 -3.5, %v228_v16  ;;  %v1031_v29 = vpop.eup %1030  ;;  %v377_v31 = vadd.f32 0.5, %v345_v21  ;;  %v885_v32 = vadd.f32 -3.5, %v229_v18  ;;  %v438_v21 = vld [vmem:[#allocation2 + $0x110] sm:$0xff] }
  0x5f   : > { %609 = vmatpush.bf16.msra.mxu1 %v511_v20  ;;  %916 = vmatpush.bf16.msra.mxu3 %v511_v20  ;;  %v1033_v36 = vpop.eup %1032  ;;  %v361_v37 = vmul.f32 0.5, %v1031_v29  ;;  %v392_v39 = vadd.f32 0.5, %v360_v24  ;;  %v277_v40 = vmul.f32 0.5, %v869_v25  ;;  %1040 = vtanh.f32 %v276_v26  ;;  %v436_v20 = vld [vmem:[#allocation2 + $0x100] sm:$0xff]  ;;  %v405_v24 = vld [vmem:[#allocation2 + $0x8] sm:$0xff] }
  0x60   : > { %v1035_v41 = vpop.eup %1034  ;;  %v502_v43 = vpack.c.bf16 %v377_v31, %v376_v23  ;;  %v342_v44 = vmul.f32 0.5, %v1033_v36  ;;  %v292_v45 = vmul.f32 0.5, %v884_v28  ;;  %v293_v46 = vmul.f32 0.5, %v885_v32  ;;  %v407_v28 = vld [vmem:[#allocation2 + $0x18] sm:$0xff]  ;;  %v437_v29 = vld [vmem:[#allocation2 + $0x108] sm:$0xff] }
  0x61   : > { %v1037_v47 = vpop.eup %1036  ;;  %v393_v51 = vadd.f32 0.5, %v361_v37  ;;  %v343_v52 = vmul.f32 0.5, %v1035_v41  ;;  %1042 = vtanh.f32 %v277_v40  ;;  %v439_v31 = vld [vmem:[#allocation2 + $0x118] sm:$0xff]  ;;  %v468_v32 = vpack.c.bf16 %v406_v19, %v404_v15  ;;  %v408_v41 = vld [vmem:[#allocation2 + $0x20] sm:$0xff] }
  0x62   : > { %v1039_v54 = vpop.eup %1038  ;;  %521 = vmatpush.bf16.msra.mxu0 %v502_v43  ;;  %909 = vmatpush.bf16.msra.mxu2 %v502_v43  ;;  %v374_v56 = vadd.f32 0.5, %v342_v44  ;;  %v358_v57 = vmul.f32 0.5, %v1037_v47  ;;  %1044 = vtanh.f32 %v292_v45  ;;  %v484_v36 = vpack.c.bf16 %v438_v21, %v436_v20  ;;  %v410_v43 = vld [vmem:[#allocation2 + $0x30] sm:$0xff]  ;;  %v440_v44 = vld [vmem:[#allocation2 + $0x120] sm:$0xff]  ;;  %v411_v47 = vld [vmem:[#allocation2 + $0x38] sm:$0xff] }
  0x63   : > { %v510_v58 = vpack.c.bf16 %v393_v51, %v392_v39  ;;  %v375_v59 = vadd.f32 0.5, %v343_v52  ;;  %v359_v60 = vmul.f32 0.5, %v1039_v54  ;;  %1046 = vtanh.f32 %v293_v46  ;;  %v442_v45 = vld [vmem:[#allocation2 + $0x130] sm:$0xff]  ;;  %v409_v46 = vld [vmem:[#allocation2 + $0x28] sm:$0xff]  ;;  %v443_v52 = vld [vmem:[#allocation2 + $0x138] sm:$0xff] }
  0x64   : > { %v390_v62 = vadd.f32 0.5, %v358_v57  ;;  %v469_v39 = vpack.c.bf16 %v407_v28, %v405_v24  ;;  %v485_v40 = vpack.c.bf16 %v439_v31, %v437_v29  ;;  %v441_v51 = vld [vmem:[#allocation2 + $0x128] sm:$0xff]  ;;  %v470_v54 = vpack.c.bf16 %v410_v43, %v408_v41  ;;  %v448_v15 = vld [vmem:[#allocation2 + $0x160] sm:$0xff]  ;;  %v419_v19 = vld [vmem:[#allocation2 + $0x78] sm:$0xff] }
  0x65   : > { %v1041_v0 = vpop.eup %1040  ;;  %610 = vmatpush.bf16.msra.mxu1 %v510_v58  ;;  %917 = vmatpush.bf16.msra.mxu3 %v510_v58  ;;  %v501_v1 = vpack.c.bf16 %v375_v59, %v374_v56  ;;  %v391_v3 = vadd.f32 0.5, %v359_v60  ;;  %v486_v56 = vpack.c.bf16 %v442_v45, %v440_v44  ;;  %v471_v57 = vpack.c.bf16 %v411_v47, %v409_v46  ;;  %v412_v59 = vld [vmem:[#allocation2 + $0x40] sm:$0xff]  ;;  %v414_v60 = vld [vmem:[#allocation2 + $0x50] sm:$0xff]  ;;  %v449_v20 = vld [vmem:[#allocation2 + $0x168] sm:$0xff] }
  0x66   : > { %v340_v6 = vmul.f32 0.5, %v1041_v0  ;;  %v487_v58 = vpack.c.bf16 %v443_v52, %v441_v51  ;;  %v446_v0 = vld [vmem:[#allocation2 + $0x150] sm:$0xff]  ;;  %v451_v21 = vld [vmem:[#allocation2 + $0x178] sm:$0xff]  ;;  %v420_v28 = vld [vmem:[#allocation2 + $0x80] sm:$0xff] }
  0x67   : > { %v1043_v7 = vpop.eup %1042  ;;  %522 = vmatpush.bf16.msra.mxu0 %v501_v1  ;;  %910 = vmatpush.bf16.msra.mxu2 %v501_v1  ;;  %v509_v9 = vpack.c.bf16 %v391_v3, %v390_v62  ;;  %v444_v62 = vld [vmem:[#allocation2 + $0x140] sm:$0xff]  ;;  %v413_v1 = vld [vmem:[#allocation2 + $0x48] sm:$0xff]  ;;  %v415_v3 = vld [vmem:[#allocation2 + $0x58] sm:$0xff] }
  0x68   : > { %v1045_v10 = vpop.eup %1044  ;;  %v341_v11 = vmul.f32 0.5, %v1043_v7  ;;  %v372_v12 = vadd.f32 0.5, %v340_v6  ;;  %v445_v6 = vld [vmem:[#allocation2 + $0x148] sm:$0xff]  ;;  %v447_v7 = vld [vmem:[#allocation2 + $0x158] sm:$0xff]  ;;  %v422_v29 = vld [vmem:[#allocation2 + $0x90] sm:$0xff] }
  0x69   : > { %v1047_v13 = vpop.eup %1046  ;;  %611 = vmatpush.bf16.msra.mxu1 %v509_v9  ;;  %918 = vmatpush.bf16.msra.mxu3 %v509_v9  ;;  %v356_v14 = vmul.f32 0.5, %v1045_v10  ;;  %v472_v9 = vpack.c.bf16 %v414_v60, %v412_v59  ;;  %v488_v10 = vpack.c.bf16 %v446_v0, %v444_v62  ;;  %v452_v31 = vld [vmem:[#allocation2 + $0x180] sm:$0xff]  ;;  %v476_v41 = vpack.c.bf16 %v422_v29, %v420_v28  ;;  %v426_v47 = vld [vmem:[#allocation2 + $0xb0] sm:$0xff] }
  0x6a   : > { %v373_v16 = vadd.f32 0.5, %v341_v11  ;;  %v357_v18 = vmul.f32 0.5, %v1047_v13  ;;  %v473_v11 = vpack.c.bf16 %v415_v3, %v413_v1  ;;  %v416_v13 = vld [vmem:[#allocation2 + $0x60] sm:$0xff]  ;;  %v458_v52 = vld [vmem:[#allocation2 + $0x1b0] sm:$0xff] }
  0x6b   : > { %v388_v23 = vadd.f32 0.5, %v356_v14  ;;  %v418_v14 = vld [vmem:[#allocation2 + $0x70] sm:$0xff]  ;;  %v424_v46 = vld [vmem:[#allocation2 + $0xa0] sm:$0xff] }
  0x6c   : > { %v500_v25 = vpack.c.bf16 %v373_v16, %v372_v12  ;;  %v389_v26 = vadd.f32 0.5, %v357_v18  ;;  %v489_v12 = vpack.c.bf16 %v447_v7, %v445_v6  ;;  %v450_v16 = vld [vmem:[#allocation2 + $0x170] sm:$0xff]  ;;  %v417_v18 = vld [vmem:[#allocation2 + $0x68] sm:$0xff]  ;;  %v456_v51 = vld [vmem:[#allocation2 + $0x1a0] sm:$0xff]  ;;  %v478_v59 = vpack.c.bf16 %v426_v47, %v424_v46 }
  0x6d   : > { %v490_v24 = vpack.c.bf16 %v450_v16, %v448_v15  ;;  %v494_v60 = vpack.c.bf16 %v458_v52, %v456_v51  ;;  %v428_v1 = vld [vmem:[#allocation2 + $0xc0] sm:$0xff]  ;;  %v430_v3 = vld [vmem:[#allocation2 + $0xd0] sm:$0xff] }
  0x6e   : > { %523 = vmatpush.bf16.msra.mxu0 %v500_v25  ;;  %911 = vmatpush.bf16.msra.mxu2 %v500_v25  ;;  %v508_v37 = vpack.c.bf16 %v389_v26, %v388_v23  ;;  %v474_v23 = vpack.c.bf16 %v418_v14, %v416_v13  ;;  %v475_v25 = vpack.c.bf16 %v419_v19, %v417_v18  ;;  %v460_v6 = vld [vmem:[#allocation2 + $0x1c0] sm:$0xff]  ;;  %v462_v7 = vld [vmem:[#allocation2 + $0x1d0] sm:$0xff] }
  0x6f   : > { %v491_v26 = vpack.c.bf16 %v451_v21, %v449_v20  ;;  %v480_v13 = vpack.c.bf16 %v430_v3, %v428_v1  ;;  %v496_v14 = vpack.c.bf16 %v462_v7, %v460_v6  ;;  %v432_v18 = vld [vmem:[#allocation2 + $0xe0] sm:$0xff]  ;;  %v434_v19 = vld [vmem:[#allocation2 + $0xf0] sm:$0xff] }
  0x70   : > { %612 = vmatpush.bf16.msra.mxu1 %v508_v37  ;;  %919 = vmatpush.bf16.msra.mxu3 %v508_v37  ;;  %v423_v37 = vld [vmem:[#allocation2 + $0x98] sm:$0xff]  ;;  %v464_v20 = vld [vmem:[#allocation2 + $0x1e0] sm:$0xff]  ;;  %v466_v21 = vld [vmem:[#allocation2 + $0x1f0] sm:$0xff]  ;;  %v482_v28 = vpack.c.bf16 %v434_v19, %v432_v18 }
  0x71   : > { %524 = vmatmul.bf16.vlgmr.msra.gmra.mxu0 %v468_v32  ;;  %564 = vmatmul.bf16.vlgmr.msra.gmra.mxu2 %v484_v36  ;;  %v454_v32 = vld [vmem:[#allocation2 + $0x190] sm:$0xff]  ;;  %v421_v36 = vld [vmem:[#allocation2 + $0x88] sm:$0xff]  ;;  %v498_v29 = vpack.c.bf16 %v466_v21, %v464_v20 }
  0x72   : > { %v492_v43 = vpack.c.bf16 %v454_v32, %v452_v31  ;;  %v477_v44 = vpack.c.bf16 %v423_v37, %v421_v36 }
  0x73   : > { %613 = vmatmul.bf16.vlgmr.msra.gmra.mxu1 %v469_v39  ;;  %653 = vmatmul.bf16.vlgmr.msra.gmra.mxu3 %v485_v40  ;;  %v453_v39 = vld [vmem:[#allocation2 + $0x188] sm:$0xff]  ;;  %v455_v40 = vld [vmem:[#allocation2 + $0x198] sm:$0xff] }
  0x74   : > { %v493_v45 = vpack.c.bf16 %v455_v40, %v453_v39 }
  0x81   : > { %529 = vmatmul.bf16.gmra.mxu0 %v470_v54  ;;  %569 = vmatmul.bf16.gmra.mxu2 %v486_v56  ;;  %v425_v54 = vld [vmem:[#allocation2 + $0xa8] sm:$0xff]  ;;  %v427_v56 = vld [vmem:[#allocation2 + $0xb8] sm:$0xff] }
  0x82   : > { %v479_v62 = vpack.c.bf16 %v427_v56, %v425_v54 }
  0x83   : > { %618 = vmatmul.bf16.gmra.mxu1 %v471_v57  ;;  %658 = vmatmul.bf16.gmra.mxu3 %v487_v58  ;;  %v457_v57 = vld [vmem:[#allocation2 + $0x1a8] sm:$0xff]  ;;  %v459_v58 = vld [vmem:[#allocation2 + $0x1b8] sm:$0xff] }
  0x84   : > { %v495_v0 = vpack.c.bf16 %v459_v58, %v457_v57 }
  0x91   : > { %534 = vmatmul.bf16.gmra.mxu0 %v472_v9  ;;  %574 = vmatmul.bf16.gmra.mxu2 %v488_v10  ;;  %v429_v9 = vld [vmem:[#allocation2 + $0xc8] sm:$0xff]  ;;  %v431_v10 = vld [vmem:[#allocation2 + $0xd8] sm:$0xff] }
  0x92   : > { %v481_v15 = vpack.c.bf16 %v431_v10, %v429_v9 }
  0x93   : > { %623 = vmatmul.bf16.gmra.mxu1 %v473_v11  ;;  %663 = vmatmul.bf16.gmra.mxu3 %v489_v12  ;;  %v461_v11 = vld [vmem:[#allocation2 + $0x1c8] sm:$0xff]  ;;  %v463_v12 = vld [vmem:[#allocation2 + $0x1d8] sm:$0xff] }
  0x94   : > { %v497_v16 = vpack.c.bf16 %v463_v12, %v461_v11 }
  0xa1   : > { %539 = vmatmul.bf16.gmra.mxu0 %v474_v23  ;;  %579 = vmatmul.bf16.gmra.mxu2 %v490_v24  ;;  %v433_v23 = vld [vmem:[#allocation2 + $0xe8] sm:$0xff]  ;;  %v435_v24 = vld [vmem:[#allocation2 + $0xf8] sm:$0xff] }
  0xa2   : > { %v483_v31 = vpack.c.bf16 %v435_v24, %v433_v23 }
  0xa3   : > { %628 = vmatmul.bf16.gmra.mxu1 %v475_v25  ;;  %668 = vmatmul.bf16.gmra.mxu3 %v491_v26  ;;  %v465_v25 = vld [vmem:[#allocation2 + $0x1e8] sm:$0xff]  ;;  %v467_v26 = vld [vmem:[#allocation2 + $0x1f8] sm:$0xff] }
  0xa4   : > { %v499_v32 = vpack.c.bf16 %v467_v26, %v465_v25 }
  0xb1   : > { %544 = vmatmul.bf16.gmra.mxu0 %v476_v41  ;;  %584 = vmatmul.bf16.gmra.mxu2 %v492_v43 }
  0xb3   : > { %633 = vmatmul.bf16.gmra.mxu1 %v477_v44  ;;  %673 = vmatmul.bf16.gmra.mxu3 %v493_v45 }
  0xc1   : > { %549 = vmatmul.bf16.gmra.mxu0 %v478_v59  ;;  %589 = vmatmul.bf16.gmra.mxu2 %v494_v60 }
  0xc3   : > { %638 = vmatmul.bf16.gmra.mxu1 %v479_v62  ;;  %678 = vmatmul.bf16.gmra.mxu3 %v495_v0 }
  0xd1   : > { %554 = vmatmul.bf16.gmra.mxu0 %v480_v13  ;;  %594 = vmatmul.bf16.gmra.mxu2 %v496_v14 }
  0xd3   : > { %643 = vmatmul.bf16.gmra.mxu1 %v481_v15  ;;  %683 = vmatmul.bf16.gmra.mxu3 %v497_v16 }
  0xe1   : > { %559 = vmatmul.bf16.gmra.mxu0 %v482_v28  ;;  %599 = vmatmul.bf16.gmra.mxu2 %v498_v29 }
  0xe3   : > { %648 = vmatmul.bf16.gmra.mxu1 %v483_v31  ;;  %688 = vmatmul.bf16.gmra.mxu3 %v499_v32 }
  0xee   : > { %v525_v36 = vpop.f32.mrf.mxu0 }
  0xf0   : > { %v614_v37 = vpop.f32.mrf.mxu1 }
  0xf1   : > { %v615_v39 = vadd.f32 %v614_v37, %v525_v36 }
  0xf3   : > { %v694_v40 = vsub.f32 %v615_v39, %v1406_v50 }
  0xf4   : > { %v565_v41 = vpop.f32.mrf.mxu2 }
  0xf5   : > { %726 = vst [vmem:[%s1424_s15] sm:$0xff] %v694_v40 }
  0xf6   : > { %v654_v43 = vpop.f32.mrf.mxu3  ;;  %v527_v44 = vpop.f32.mrf.mxu0 }
  0xf7   : > { %v655_v45 = vadd.f32 %v654_v43, %v565_v41 }
  0xf8   : > { %v616_v46 = vpop.f32.mrf.mxu1 }
  0xf9   : > { %v710_v47 = vsub.f32 %v655_v45, %v1413_v4  ;;  %v617_v51 = vadd.f32 %v616_v46, %v527_v44 }
  0xfb   : > { %742 = vst [vmem:[%s1424_s15 + $0x80] sm:$0xff] %v710_v47  ;;  %v695_v50 = vsub.f32 %v617_v51, %v1409_v63 }
  0xfc   : > { %v567_v52 = vpop.f32.mrf.mxu2 }
  0xfd   : > { %727 = vst [vmem:[%s1424_s15 + $0x8] sm:$0xff] %v695_v50 }
  0xfe   : > { %v656_v54 = vpop.f32.mrf.mxu3  ;;  %v530_v56 = vpop.f32.mrf.mxu0 }
  0xff   : > { %v657_v57 = vadd.f32 %v656_v54, %v567_v52 }
 0x100   : > { %v619_v58 = vpop.f32.mrf.mxu1 }
 0x101   : > { %v711_v59 = vsub.f32 %v657_v57, %v1416_v5  ;;  %v620_v60 = vadd.f32 %v619_v58, %v530_v56 }
 0x103   : > { %743 = vst [vmem:[%s1424_s15 + $0x88] sm:$0xff] %v711_v59  ;;  %v696_v62 = vsub.f32 %v620_v60, %v1389_v22 }
 0x104   : > { %v570_v0 = vpop.f32.mrf.mxu2 }
 0x105   : > { %728 = vst [vmem:[%s1424_s15 + $0x10] sm:$0xff] %v696_v62 }
 0x106   : > { %v659_v4 = vpop.f32.mrf.mxu3  ;;  %v532_v1 = vpop.f32.mrf.mxu0 }
 0x107   : > { %v660_v63 = vadd.f32 %v659_v4, %v570_v0 }
 0x108   : > { %v621_v3 = vpop.f32.mrf.mxu1 }
 0x109   : > { %v712_v6 = vsub.f32 %v660_v63, %v1396_v33  ;;  %v622_v7 = vadd.f32 %v621_v3, %v532_v1 }
 0x10b   : > { %744 = vst [vmem:[%s1424_s15 + $0x90] sm:$0xff] %v712_v6  ;;  %v697_v9 = vsub.f32 %v622_v7, %v1392_v27 }
 0x10c   : > { %v572_v10 = vpop.f32.mrf.mxu2 }
 0x10d   : > { %729 = vst [vmem:[%s1424_s15 + $0x18] sm:$0xff] %v697_v9  ;;  %v1049_v9 = vld [vmem:[%s1323_s24 + $0xd0] sm:$0xff] }
 0x10e   : > { %v661_v5 = vpop.f32.mrf.mxu3  ;;  %v535_v11 = vpop.f32.mrf.mxu0 }
 0x10f   : > { %v662_v22 = vadd.f32 %v661_v5, %v572_v10 }
 0x110   : > { %v624_v12 = vpop.f32.mrf.mxu1 }
 0x111   : > { %v713_v13 = vsub.f32 %v662_v22, %v1399_v35  ;;  %v625_v14 = vadd.f32 %v624_v12, %v535_v11 }
 0x113   : > { %745 = vst [vmem:[%s1424_s15 + $0x98] sm:$0xff] %v713_v13  ;;  %v698_v15 = vsub.f32 %v625_v14, %v1373_v55 }
 0x114   : > { %v575_v16 = vpop.f32.mrf.mxu2 }
 0x115   : > { %730 = vst [vmem:[%s1424_s15 + $0x20] sm:$0xff] %v698_v15 }
 0x116   : > { %v664_v33 = vpop.f32.mrf.mxu3  ;;  %v537_v18 = vpop.f32.mrf.mxu0 }
 0x117   : > { %v665_v27 = vadd.f32 %v664_v33, %v575_v16  ;;  %v1051_v16 = vld [vmem:[%s1323_s24 + $0xd8] sm:$0xff] }
 0x118   : > { %v626_v19 = vpop.f32.mrf.mxu1 }
 0x119   : > { %v714_v20 = vsub.f32 %v665_v27, %v1381_v8  ;;  %v627_v21 = vadd.f32 %v626_v19, %v537_v18  ;;  %v1052_v27 = vld [vmem:[%s1323_s24 + $0x60] sm:$0xff] }
 0x11b   : > { %746 = vst [vmem:[%s1424_s15 + $0xa0] sm:$0xff] %v714_v20  ;;  %v699_v23 = vsub.f32 %v627_v21, %v1377_v2 }
 0x11c   : > { %v577_v24 = vpop.f32.mrf.mxu2 }
 0x11d   : > { %731 = vst [vmem:[%s1424_s15 + $0x28] sm:$0xff] %v699_v23 }
 0x11e   : > { %v666_v35 = vpop.f32.mrf.mxu3  ;;  %v540_v25 = vpop.f32.mrf.mxu0 }
 0x11f   : > { %v667_v55 = vadd.f32 %v666_v35, %v577_v24 }
 0x120   : > { %v629_v26 = vpop.f32.mrf.mxu1 }
 0x121   : > { %v715_v28 = vsub.f32 %v667_v55, %v1385_v17  ;;  %v630_v29 = vadd.f32 %v629_v26, %v540_v25  ;;  %v1053_v25 = vld [vmem:[%s1323_s24 + $0xe0] sm:$0xff] }
 0x123   : > { %747 = vst [vmem:[%s1424_s15 + $0xa8] sm:$0xff] %v715_v28  ;;  %v700_v31 = vsub.f32 %v630_v29, %v1356_v53  ;;  %v1054_v28 = vld [vmem:[%s1323_s24 + $0x68] sm:$0xff] }
 0x124   : > { %v580_v32 = vpop.f32.mrf.mxu2 }
 0x125   : > { %732 = vst [vmem:[%s1424_s15 + $0x30] sm:$0xff] %v700_v31 }
 0x126   : > { %v669_v8 = vpop.f32.mrf.mxu3  ;;  %v542_v36 = vpop.f32.mrf.mxu0 }
 0x127   : > { %v670_v2 = vadd.f32 %v669_v8, %v580_v32 }
 0x128   : > { %v631_v37 = vpop.f32.mrf.mxu1 }
 0x129   : > { %v716_v39 = vsub.f32 %v670_v2, %v1366_v30  ;;  %v632_v40 = vadd.f32 %v631_v37, %v542_v36  ;;  %v1055_v37 = vld [vmem:[%s1323_s24 + $0xe8] sm:$0xff] }
 0x12b   : > { %748 = vst [vmem:[%s1424_s15 + $0xb0] sm:$0xff] %v716_v39  ;;  %v701_v41 = vsub.f32 %v632_v40, %v1361_v61 }
 0x12c   : > { %v582_v43 = vpop.f32.mrf.mxu2 }
 0x12d   : > { %733 = vst [vmem:[%s1424_s15 + $0x38] sm:$0xff] %v701_v41  ;;  %v1056_v41 = vld [vmem:[%s1323_s24 + $0x70] sm:$0xff] }
 0x12e   : > { %v671_v17 = vpop.f32.mrf.mxu3  ;;  %v545_v44 = vpop.f32.mrf.mxu0 }
 0x12f   : > { %v672_v53 = vadd.f32 %v671_v17, %v582_v43 }
 0x130   : > { %v634_v45 = vpop.f32.mrf.mxu1 }
 0x131   : > { %v717_v46 = vsub.f32 %v672_v53, %v1369_v42  ;;  %v635_v47 = vadd.f32 %v634_v45, %v545_v44 }
 0x133   : > { %749 = vst [vmem:[%s1424_s15 + $0xb8] sm:$0xff] %v717_v46  ;;  %v702_v51 = vsub.f32 %v635_v47, %v1342_v34  ;;  %v1057_v47 = vld [vmem:[%s1323_s24 + $0xf0] sm:$0xff] }
 0x134   : > { %v585_v50 = vpop.f32.mrf.mxu2 }
 0x135   : > { %734 = vst [vmem:[%s1424_s15 + $0x40] sm:$0xff] %v702_v51 }
 0x136   : > { %v674_v30 = vpop.f32.mrf.mxu3  ;;  %v547_v52 = vpop.f32.mrf.mxu0 }
 0x137   : > { %v675_v61 = vadd.f32 %v674_v30, %v585_v50  ;;  %v1058_v30 = vld [vmem:[%s1323_s24 + $0x78] sm:$0xff] }
 0x138   : > { %v636_v54 = vpop.f32.mrf.mxu1 }
 0x139   : > { %v718_v56 = vsub.f32 %v675_v61, %v1350_v48  ;;  %v637_v57 = vadd.f32 %v636_v54, %v547_v52  ;;  %v1048_v48 = vld [vmem:[%s1323_s24 + $0x50] sm:$0xff] }
 0x13b   : > { %750 = vst [vmem:[%s1424_s15 + $0xc0] sm:$0xff] %v718_v56  ;;  %v703_v58 = vsub.f32 %v637_v57, %v1345_v38  ;;  %v1059_v57 = vld [vmem:[%s1323_s24 + $0xf8] sm:$0xff] }
 0x13c   : > { %v587_v42 = vpop.f32.mrf.mxu2 }
 0x13d   : > { %735 = vst [vmem:[%s1424_s15 + $0x48] sm:$0xff] %v703_v58 }
 0x13e   : > { %v676_v59 = vpop.f32.mrf.mxu3  ;;  %v550_v34 = vpop.f32.mrf.mxu0 }
 0x13f   : > { %v677_v60 = vadd.f32 %v676_v59, %v587_v42 }
 0x140   : > { %v639_v62 = vpop.f32.mrf.mxu1 }
 0x141   : > { %v719_v0 = vsub.f32 %v677_v60, %v1353_v49  ;;  %v640_v4 = vadd.f32 %v639_v62, %v550_v34  ;;  %v1050_v49 = vld [vmem:[%s1323_s24 + $0x58] sm:$0xff] }
 0x143   : > { %751 = vst [vmem:[%s1424_s15 + $0xc8] sm:$0xff] %v719_v0  ;;  %v704_v1 = vsub.f32 %v640_v4, %v1048_v48 }
 0x144   : > { %v590_v63 = vpop.f32.mrf.mxu2 }
 0x145   : > { %736 = vst [vmem:[%s1424_s15 + $0x50] sm:$0xff] %v704_v1 }
 0x146   : > { %v679_v3 = vpop.f32.mrf.mxu3  ;;  %v552_v38 = vpop.f32.mrf.mxu0 }
 0x147   : > { %v680_v6 = vadd.f32 %v679_v3, %v590_v63 }
 0x148   : > { %v641_v7 = vpop.f32.mrf.mxu1 }
 0x149   : > { %v720_v10 = vsub.f32 %v680_v6, %v1049_v9  ;;  %v642_v5 = vadd.f32 %v641_v7, %v552_v38 }
 0x14b   : > { %752 = vst [vmem:[%s1424_s15 + $0xd0] sm:$0xff] %v720_v10  ;;  %v705_v11 = vsub.f32 %v642_v5, %v1050_v49 }
 0x14c   : > { %v592_v22 = vpop.f32.mrf.mxu2 }
 0x14d   : > { %737 = vst [vmem:[%s1424_s15 + $0x58] sm:$0xff] %v705_v11 }
 0x14e   : > { %v681_v12 = vpop.f32.mrf.mxu3  ;;  %v555_v13 = vpop.f32.mrf.mxu0 }
 0x14f   : > { %v682_v14 = vadd.f32 %v681_v12, %v592_v22 }
 0x150   : > { %v644_v15 = vpop.f32.mrf.mxu1 }
 0x151   : > { %v721_v33 = vsub.f32 %v682_v14, %v1051_v16  ;;  %v645_v18 = vadd.f32 %v644_v15, %v555_v13 }
 0x153   : > { %753 = vst [vmem:[%s1424_s15 + $0xd8] sm:$0xff] %v721_v33  ;;  %v706_v19 = vsub.f32 %v645_v18, %v1052_v27 }
 0x154   : > { %v595_v20 = vpop.f32.mrf.mxu2 }
 0x155   : > { %738 = vst [vmem:[%s1424_s15 + $0x60] sm:$0xff] %v706_v19 }
 0x156   : > { %v684_v21 = vpop.f32.mrf.mxu3  ;;  %v557_v23 = vpop.f32.mrf.mxu0 }
 0x157   : > { %v685_v24 = vadd.f32 %v684_v21, %v595_v20 }
 0x158   : > { %v646_v35 = vpop.f32.mrf.mxu1 }
 0x159   : > { %v722_v55 = vsub.f32 %v685_v24, %v1053_v25  ;;  %v647_v26 = vadd.f32 %v646_v35, %v557_v23 }
 0x15b   : > { %754 = vst [vmem:[%s1424_s15 + $0xe0] sm:$0xff] %v722_v55  ;;  %v707_v29 = vsub.f32 %v647_v26, %v1054_v28 }
 0x15c   : > { %v597_v31 = vpop.f32.mrf.mxu2 }
 0x15d   : > { %739 = vst [vmem:[%s1424_s15 + $0x68] sm:$0xff] %v707_v29 }
 0x15e   : > { %v686_v32 = vpop.f32.mrf.mxu3  ;;  %v560_v8 = vpop.f32.mrf.mxu0 }
 0x15f   : > { %v687_v36 = vadd.f32 %v686_v32, %v597_v31 }
 0x160   : > { %v649_v2 = vpop.f32.mrf.mxu1 }
 0x161   : > { %v723_v39 = vsub.f32 %v687_v36, %v1055_v37  ;;  %v650_v40 = vadd.f32 %v649_v2, %v560_v8 }
 0x163   : > { %755 = vst [vmem:[%s1424_s15 + $0xe8] sm:$0xff] %v723_v39  ;;  %v708_v43 = vsub.f32 %v650_v40, %v1056_v41 }
 0x164   : > { %v600_v17 = vpop.f32.mrf.mxu2 }
 0x165   : > { %740 = vst [vmem:[%s1424_s15 + $0x70] sm:$0xff] %v708_v43 }
 0x166   : > { %v689_v44 = vpop.f32.mrf.mxu3  ;;  %v562_v53 = vpop.f32.mrf.mxu0 }
 0x167   : > { %v690_v45 = vadd.f32 %v689_v44, %v600_v17 }
 0x168   : > { %v651_v46 = vpop.f32.mrf.mxu1 }
 0x169   : > { %v724_v51 = vsub.f32 %v690_v45, %v1057_v47  ;;  %v652_v50 = vadd.f32 %v651_v46, %v562_v53 }
 0x16b   : > { %756 = vst [vmem:[%s1424_s15 + $0xf0] sm:$0xff] %v724_v51  ;;  %v709_v52 = vsub.f32 %v652_v50, %v1058_v30 }
 0x16c   : > { %v602_v61 = vpop.f32.mrf.mxu2 }
 0x16d   : > { %741 = vst [vmem:[%s1424_s15 + $0x78] sm:$0xff] %v709_v52 }
 0x16e   : > { %v691_v54 = vpop.f32.mrf.mxu3 }
 0x16f   : > { %v692_v56 = vadd.f32 %v691_v54, %v602_v61 }
 0x171   : > { %v725_v58 = vsub.f32 %v692_v56, %v1059_v57 }
 0x173   : > { %757 = vst [vmem:[%s1424_s15 + $0xf8] sm:$0xff] %v725_v58 }
 0x174   : > { %1147 = shalt.err (!%p1144_p10)
}
 0x175   : > { %s1197_s5 = smov 128   ;;  %s1198_s6 = smov 256  }
 0x176   : > { %s1199_s7 = smov 8  }
 0x177   : > { %926 = dma.vmem_to_hbm [thread:$0]  (%p1284_p7), %s771_s19, 4096, %s773_s21, %s759_s13, %s1197_s5, %s1198_s6, %s1199_s7  }
 0x178 PF: > { %s787_s14 = sand.u32 1, %s1178_s9   ;;  %p1531_p12 = scmp.ge.s32.totalorder %s1190_s12, 2 }
 0x179   : > { %s788_s24 = scalar_lea.sflag [#allocation4], %s787_s14 }
 0x17a   : > { %p937_p13 = pnand %p1531_p12, %p1250_p6 }
 0x17c   : > { %p938_p0 = pneg %p937_p13 }
 0x17e   : > { %1173 = dma.done.wait (%p938_p0), %s788_s24, 4096  }
 0x17f   : > { %1175 = vsyncadd (%p938_p0), %s788_s24, 4294963200  ;;  %p16_p3 = scmp.ge.s32.totalorder %s1268_s23, 4   ;;  %s1532_s9 = smov %s1182_s10 }
 0x180   : > { %s1533_s10 = smov %s1186_s11  ;;  %s1534_s11 = smov %s1280_s28 }
 0x181   : > { %s1535_s12 = smov %s1268_s23  ;;  %18 = sbr.rel (!%p16_p3) target bundleno = 6 (0x6), region = 78 }
 0x186   :  { %794 = vsyncpa [#allocation3], 1 }
 0x187   :  { %796 = vsyncpa [#allocation3 + $0x1], 1 }
 0x188   :  { %797 = vsyncpa [#allocation6], 1 }
 0x189   :  { %799 = vsyncpa [#allocation6 + $0x1], 1 }
 0x18a   :  { %800 = vsyncpa [#allocation4], 1 }
 0x18b   :  { %802 = vsyncpa [#allocation4 + $0x1], 1 }

</bundles_post_ra>
